<compile_context>
chip_gen: v5e
topology: v5e:2x2
jax: 0.10.0
libtpu: 0.0.40
codegen_flags: <defaults>
</compile_context>

<pallas_src>
import functools

import jax
import jax.numpy as jnp
from jax.experimental import pallas as pl
from jax.experimental.pallas import tpu as pltpu


_NUM_JOINTS = 12
_PACK = 32                       # original rows packed into one lane-dense row
_LANES = _NUM_JOINTS * _PACK     # 384 = 3 * 128 -> unmasked, lane-dense stores


def stand_only_kernel(jp_ref, inv_dof_ref, inv_act_ref, out_ref, *,
                      tolerance: float, delta: float):
    # jp_ref:      (block_rows, 384) raw joint positions, 32 robots per row
    # inv_dof_ref: (1, 384)          1/dof_pos_scale, per-joint pattern tiled x32
    # inv_act_ref: (1, 384)          1/action_scale,  per-joint pattern tiled x32
    # out_ref:     (block_rows, 384)
    raw = jp_ref[...]
    jp = raw * inv_dof_ref[...]
    # delta * sign(jp) as a single select (sign would be 2 cmps + selects + mul).
    # jp == 0 rows fall in the masked-off branch below, so the sign(0)=0 case
    # of the reference never reaches the output.
    step = jnp.where(jp >= 0.0, delta, -delta)
    tgt = jnp.where(jnp.abs(jp) > tolerance, jp - step, 0.0)
    out_ref[...] = jnp.clip(tgt * inv_act_ref[...], -1.0, 1.0)


def _as_tiled_row(scale):
    # Accept scalar or length-12 per-joint scale; return the per-joint pattern
    # repeated 32x as a (1, 384) f32 row matching the packed layout.
    s = jnp.ravel(jnp.asarray(scale, jnp.float32))
    s = jnp.broadcast_to(s, (_NUM_JOINTS,)).reshape(1, _NUM_JOINTS)
    return jnp.tile(s, (1, _PACK))


def stand_only_forward(obs, dof_pos_scale, action_scale,
                       tolerance: float = 0.2, delta: float = 0.1,
                       block_rows=None):
    """obs: (B, 48) float32. Returns (B, 12) float32."""
    B, F = obs.shape
    assert F == 48, "StandOnlyModel expects 48-dim proprioception"

    # Only columns 12:24 (== obs[..., -36:-24] for F=48) are used.
    jp_raw = obs[:, 12:24].astype(jnp.float32)

    # NOTE: reciprocal multiply can differ from the PyTorch divide by ~1 ulp
    # for non-power-of-two scales; values exactly at |jp| == tolerance could
    # flip the mask.  Exact for the power-of-two scales used here.
    inv_dof = 1.0 / _as_tiled_row(dof_pos_scale)
    inv_act = 1.0 / _as_tiled_row(action_scale)

    # Lane-dense packing: 32 original rows -> one 384-lane row.
    rows_total = pl.cdiv(B, _PACK)
    if block_rows is None:
        # Single grid step for anything up to 2048 packed rows (65K original
        # rows); larger batches use 2048-row (~3 MB) blocks so each grid step
        # is multiple microseconds of HBM traffic (worth sharding on v7x,
        # harmless no-op on v5e/v6e).
        block_rows = min(max(8, 8 * pl.cdiv(rows_total, 8)), 2048)
    block_rows = max(8, 8 * pl.cdiv(block_rows, 8))      # sublane (8) aligned

    rows_padded = block_rows * pl.cdiv(rows_total, block_rows)
    Bp = rows_padded * _PACK
    if Bp != B:
        # Padded rows are zeros: elementwise compute on them is harmless and
        # they are sliced off the output (do not reduce across rows in-kernel).
        jp_raw = jnp.pad(jp_raw, ((0, Bp - B), (0, 0)))
    jp_packed = jp_raw.reshape(rows_padded, _LANES)       # free row-major reshape

    kernel = functools.partial(stand_only_kernel,
                               tolerance=float(tolerance), delta=float(delta))

    out = pl.pallas_call(
        kernel,
        out_shape=jax.ShapeDtypeStruct((rows_padded, _LANES), jnp.float32),
        grid_spec=pltpu.PrefetchScalarGridSpec(
            num_scalar_prefetch=0,
            grid=(rows_padded // block_rows,),
            in_specs=[
                pl.BlockSpec((block_rows, _LANES), lambda i: (i, 0)),  # packed joint pos
                pl.BlockSpec((1, _LANES), lambda i: (0, 0)),           # 1/dof_pos_scale (resident)
                pl.BlockSpec((1, _LANES), lambda i: (0, 0)),           # 1/action_scale  (resident)
            ],
            out_specs=pl.BlockSpec((block_rows, _LANES), lambda i: (i, 0)),
        ),
        compiler_params=pltpu.CompilerParams(
            dimension_semantics=("parallel",),
            allow_input_fusion=[True, False, False],
        ),
    )(jp_packed, inv_dof, inv_act)

    return out.reshape(Bp, _NUM_JOINTS)[:B]


def stand_only_ref(obs, dof_pos_scale, action_scale,
                   tolerance: float = 0.2, delta: float = 0.1):
    dof = jnp.broadcast_to(jnp.ravel(jnp.asarray(dof_pos_scale, jnp.float32)),
                           (_NUM_JOINTS,))
    act = jnp.broadcast_to(jnp.ravel(jnp.asarray(action_scale, jnp.float32)),
                           (_NUM_JOINTS,))
    jp = obs[..., -36:-24] / dof
    tgt = jnp.where(jnp.abs(jp) > tolerance, jp - delta * jnp.sign(jp), 0.0)
    return jnp.clip(tgt / act, -1.0, 1.0)


if __name__ == "__main__":
    key = jax.random.PRNGKey(0)
    B = 300                     # not a pack/tile multiple: exercises padded tail
    obs = jax.random.normal(key, (B, 48), dtype=jnp.float32)

    # Per-joint buffers (module accepts scalar or per-joint list; power-of-two
    # scales make reciprocal-multiply bit-identical to the divide reference).
    action_scale = jnp.full((12,), 0.25, dtype=jnp.float32)
    dof_pos_scale = jnp.full((12,), 1.0, dtype=jnp.float32)
    tolerance, delta = 0.2, 0.1

    out = stand_only_forward(obs, dof_pos_scale, action_scale,
                             tolerance=tolerance, delta=delta)
    out = jax.block_until_ready(out)

    ref = stand_only_ref(obs, dof_pos_scale, action_scale,
                         tolerance=tolerance, delta=delta)
    assert out.shape == (B, 12)
    assert jnp.allclose(out, ref, atol=1e-6), "mismatch vs pure-JAX reference"

    print("KERNEL_OK")
</pallas_src>

<mosaic_0001>
module attributes {stable_mosaic.version = 11 : i64} {
  func.func @stand_only_kernel(%arg0: i32, %arg1: memref<16x384xf32, #tpu.memory_space<vmem>>, %arg2: memref<1x384xf32, #tpu.memory_space<vmem>>, %arg3: memref<1x384xf32, #tpu.memory_space<vmem>>, %arg4: memref<16x384xf32, #tpu.memory_space<vmem>>) attributes {dimension_semantics = [#tpu.dimension_semantics<parallel>], iteration_bounds = array<i64: 1>, scalar_prefetch = 0 : i64, scratch_operands = 0 : i64, tpu.core_type = #tpu.core_type<tc>, window_params = [{transform_indices = @transform_0, window_bounds = array<i64: 16, 384>}, {pipeline_mode = #tpu.pipeline_mode<synchronous>, transform_indices = @transform_1, window_bounds = array<i64: 1, 384>}, {pipeline_mode = #tpu.pipeline_mode<synchronous>, transform_indices = @transform_2, window_bounds = array<i64: 1, 384>}, {transform_indices = @transform_3, window_bounds = array<i64: 16, 384>}]} {
    %c0 = arith.constant 0 : index
    %c0_0 = arith.constant 0 : index
    %0 = vector.load %arg1[%c0, %c0_0] : memref<16x384xf32, #tpu.memory_space<vmem>>, vector<16x384xf32>
    %c0_1 = arith.constant 0 : index
    %c0_2 = arith.constant 0 : index
    %1 = vector.load %arg2[%c0_1, %c0_2] : memref<1x384xf32, #tpu.memory_space<vmem>>, vector<1x384xf32>
    %2 = vector.broadcast %1 : vector<1x384xf32> to vector<16x384xf32>
    %3 = arith.mulf %0, %2 : vector<16x384xf32>
    %cst = arith.constant 0.000000e+00 : f32
    %4 = vector.broadcast %cst : f32 to vector<16x384xf32>
    %5 = arith.cmpf oge, %3, %4 : vector<16x384xf32>
    %cst_3 = arith.constant 1.000000e-01 : f32
    %cst_4 = arith.constant -1.000000e-01 : f32
    %6 = vector.broadcast %cst_3 : f32 to vector<16x384xf32>
    %7 = vector.broadcast %cst_4 : f32 to vector<16x384xf32>
    %8 = arith.select %5, %6, %7 : vector<16x384xi1>, vector<16x384xf32>
    %9 = math.absf %3 : vector<16x384xf32>
    %cst_5 = arith.constant 2.000000e-01 : f32
    %10 = vector.broadcast %cst_5 : f32 to vector<16x384xf32>
    %11 = arith.cmpf ogt, %9, %10 : vector<16x384xf32>
    %12 = arith.subf %3, %8 : vector<16x384xf32>
    %cst_6 = arith.constant 0.000000e+00 : f32
    %13 = vector.broadcast %cst_6 : f32 to vector<16x384xf32>
    %14 = arith.select %11, %12, %13 : vector<16x384xi1>, vector<16x384xf32>
    %c0_7 = arith.constant 0 : index
    %c0_8 = arith.constant 0 : index
    %15 = vector.load %arg3[%c0_7, %c0_8] : memref<1x384xf32, #tpu.memory_space<vmem>>, vector<1x384xf32>
    %16 = vector.broadcast %15 : vector<1x384xf32> to vector<16x384xf32>
    %17 = arith.mulf %14, %16 : vector<16x384xf32>
    %cst_9 = arith.constant -1.000000e+00 : f32
    %cst_10 = arith.constant 1.000000e+00 : f32
    %18 = vector.broadcast %cst_9 : f32 to vector<16x384xf32>
    %19 = arith.maximumf %18, %17 : vector<16x384xf32>
    %20 = vector.broadcast %cst_10 : f32 to vector<16x384xf32>
    %21 = arith.minimumf %20, %19 : vector<16x384xf32>
    %c0_11 = arith.constant 0 : index
    %c0_12 = arith.constant 0 : index
    %22 = vector.load %arg4[%c0_11, %c0_12] : memref<16x384xf32, #tpu.memory_space<vmem>>, vector<16x384xf32>
    tpu.vector_store %arg4[%c0_11, %c0_12], %21 {strides = array<i32>} : memref<16x384xf32, #tpu.memory_space<vmem>>, vector<16x384xf32>,
    return
  }
  func.func @transform_0(%arg0: i32) -> (i32, i32) {
    %c0_i32 = arith.constant 0 : i32
    %c0_i32_0 = arith.constant 0 : i32
    return %arg0, %c0_i32 : i32, i32
  }
  func.func @transform_1(%arg0: i32) -> (i32, i32) {
    %c0_i32 = arith.constant 0 : i32
    %c0_i32_0 = arith.constant 0 : i32
    %c0_i32_1 = arith.constant 0 : i32
    return %c0_i32, %c0_i32_0 : i32, i32
  }
  func.func @transform_2(%arg0: i32) -> (i32, i32) {
    %c0_i32 = arith.constant 0 : i32
    %c0_i32_0 = arith.constant 0 : i32
    %c0_i32_1 = arith.constant 0 : i32
    return %c0_i32, %c0_i32_0 : i32, i32
  }
  func.func @transform_3(%arg0: i32) -> (i32, i32) {
    %c0_i32 = arith.constant 0 : i32
    %c0_i32_0 = arith.constant 0 : i32
    return %arg0, %c0_i32 : i32, i32
  }
}

</mosaic_0001>

<bundles_post_ra>
// kernel: tpu_custom_call.1
= control target key start
LH: loop header
LB: loop body
LE: loop exit
PB: predicated region body
PF: predicated region fallthrough
CT: control target
= control target key end

     0   :  { %8 = vsyncpa [#allocation3], 0  ;;  %s331_s0 = inlined_call_operand.hbm [shape: f32[16,384], index: 0, kind: input, shape index: {}]   ;;  %s332_s1 = inlined_call_operand.hbm [shape: f32[1,384], index: 1, kind: input, shape index: {}]   ;;  %s333_s2 = inlined_call_operand.hbm [shape: f32[1,384], index: 2, kind: input, shape index: {}]   ;;  %s334_s3 = inlined_call_operand.hbm [shape: f32[16,384], index: 3, kind: output, shape index: {}]  }
   0x1   :  { %9 = vsyncpa [#allocation6], 0  ;;  %s29_s14 = sshll.u32 %s332_s1, 4  ;;  %s30_s14 = int_to_ptr.hbm [resolvable:$true] %s29_s14 }
   0x2   :  { %10 = vsyncpa [#allocation4], 0  ;;  %s281_s15 = smov [#allocation5]   ;;  %s15_s19 = sshll.u32 %s331_s0, 4  ;;  %s16_s19 = int_to_ptr.hbm [resolvable:$true] %s15_s19 }
   0x3   :  { %s31_s16 = sshll.u32 %s281_s15, 4  ;;  %s282_s20 = smov [#allocation2]   ;;  %s32_s16 = int_to_ptr.vmem [resolvable:$true] %s31_s16 }
   0x4   :  { %34 = dma.hbm_to_vmem [thread:$0]  %s30_s14, 48, %s32_s16, [#allocation6]  }
   0x5   :  { %s17_s21 = sshll.u32 %s282_s20, 4  ;;  %s283_s22 = smov 384   ;;  %s18_s21 = int_to_ptr.vmem [resolvable:$true] %s17_s21 }
   0x6   :  { %s284_s23 = smov 24   ;;  %s40_s25 = sshll.u32 %s333_s2, 4  ;;  %s41_s25 = int_to_ptr.hbm [resolvable:$true] %s40_s25 }
   0x7   :  { %23 = dma.hbm_to_vmem [thread:$0]  %s16_s19, 768, %s18_s21, [#allocation3], %s283_s22, %s283_s22, %s284_s23  }
   0x8   :  { %s285_s26 = smov [#allocation7]  }
   0x9   :  { %s42_s27 = sshll.u32 %s285_s26, 4  ;;  %s43_s27 = int_to_ptr.vmem [resolvable:$true] %s42_s27 }
   0xa   :  { %45 = dma.hbm_to_vmem [thread:$0]  %s41_s25, 48, %s43_s27, [#allocation6]  }
   0xb   :  { %275 = dma.done.wait [#allocation3], 768  }
   0xc   :  { %276 = vsyncadd [#allocation3], 4294966528 }
   0xd   :  { %277 = dma.done.wait [#allocation6], 96  }
   0xe   :  { %278 = vsyncadd [#allocation6], 4294967200  ;;  %v58_v0 = vld [vmem:[#allocation2] sm:$0xff]  ;;  %v64_v1 = vld [vmem:[#allocation5] sm:$0x7]  ;;  %s287_s0 = smov [#allocation8]  }
   0xf   :  { %v320_v2 = vld [vmem:[#allocation7] sm:$0x7]  ;;  %v66_v3 = vperm.slane %v64_v1, 0  ;;  %v59_v4 = vld [vmem:[#allocation2 + $0x8] sm:$0xff]  ;;  %v67_v5 = vperm.slane %v64_v1, 1  ;;  %v68_v7 = vperm.slane %v64_v1, 2 }
  0x10   :  { %v60_v6 = vld [vmem:[#allocation2 + $0x10] sm:$0xff]  ;;  %v61_v8 = vld [vmem:[#allocation2 + $0x18] sm:$0xff]  ;;  %v62_v9 = vld [vmem:[#allocation2 + $0x20] sm:$0xff]  ;;  %v116_v11 = vperm.slane %v320_v2, 0  ;;  %v117_v14 = vperm.slane %v320_v2, 1  ;;  %v118_v16 = vperm.slane %v320_v2, 2 }
  0x11   :  { %v72_v10 = vmul.f32 %v66_v3, %v58_v0  ;;  %v73_v12 = vmul.f32 %v67_v5, %v59_v4  ;;  %v75_v13 = vmul.f32 %v66_v3, %v61_v8  ;;  %v74_v15 = vmul.f32 %v68_v7, %v60_v6  ;;  %v63_v18 = vld [vmem:[#allocation2 + $0x28] sm:$0xff]  ;;  %s150_s2 = sshll.u32 %s287_s0, 4  ;;  %s152_s30 = sshll.u32 %s334_s3, 4  ;;  %s151_s2 = int_to_ptr.vmem [resolvable:$true] %s150_s2  ;;  %s153_s30 = int_to_ptr.hbm [resolvable:$true] %s152_s30 }
  0x12   :  { %v76_v17 = vmul.f32 %v67_v5, %v62_v9  ;;  %v286_v21 = vmov -0.1   ;;  %v77_v29 = vmul.f32 %v68_v7, %v63_v18 }
  0x13   :  { %vm78_vm0 = vcmp.ge.f32.partialorder %v72_v10, 0.0  ;;  %v90_v19 = vand.u32 2147483647, %v72_v10  ;;  %vm79_vm1 = vcmp.ge.f32.partialorder %v73_v12, 0.0  ;;  %v91_v20 = vand.u32 2147483647, %v73_v12 }
  0x14   :  { %v84_v22 = vsel %vm78_vm0, 0.1, %v286_v21  ;;  %v85_v23 = vsel %vm79_vm1, 0.1, %v286_v21  ;;  %vm80_vm2 = vcmp.ge.f32.partialorder %v74_v15, 0.0  ;;  %vm81_vm3 = vcmp.ge.f32.partialorder %v75_v13, 0.0 }
  0x15   :  { %vm96_vm4 = vcmp.gt.f32.partialorder %v90_v19, 0.2  ;;  %v102_v24 = vsub.f32 %v72_v10, %v84_v22  ;;  %vm97_vm5 = vcmp.gt.f32.partialorder %v91_v20, 0.2  ;;  %v103_v25 = vsub.f32 %v73_v12, %v85_v23 }
  0x16   :  { %v86_v26 = vsel %vm80_vm2, 0.1, %v286_v21  ;;  %v92_v27 = vand.u32 2147483647, %v74_v15  ;;  %v87_v28 = vsel %vm81_vm3, 0.1, %v286_v21 }
  0x17   :  { %v108_v30 = vsel %vm96_vm4, %v102_v24, 0.0  ;;  %v109_v31 = vsel %vm97_vm5, %v103_v25, 0.0  ;;  %v104_v32 = vsub.f32 %v74_v15, %v86_v26  ;;  %v93_v33 = vand.u32 2147483647, %v75_v13 }
  0x18   :  { %v122_v34 = vmul.f32 %v116_v11, %v108_v30  ;;  %v123_v35 = vmul.f32 %v117_v14, %v109_v31  ;;  %vm98_vm6 = vcmp.gt.f32.partialorder %v92_v27, 0.2  ;;  %v105_v36 = vsub.f32 %v75_v13, %v87_v28 }
  0x19   :  { %v110_v37 = vsel %vm98_vm6, %v104_v32, 0.0  ;;  %vm99_vm7 = vcmp.gt.f32.partialorder %v93_v33, 0.2  ;;  %vm82_vm8 = vcmp.ge.f32.partialorder %v76_v17, 0.0  ;;  %v94_v38 = vand.u32 2147483647, %v76_v17 }
  0x1a   :  { %v166_v39 = vclamps-f32 %v122_v34, 1.0  ;;  %v167_v40 = vclamps-f32 %v123_v35, 1.0  ;;  %v124_v41 = vmul.f32 %v118_v16, %v110_v37  ;;  %v111_v42 = vsel %vm99_vm7, %v105_v36, 0.0 }
  0x1b   :  { %v125_v43 = vmul.f32 %v116_v11, %v111_v42  ;;  %v88_v44 = vsel %vm82_vm8, 0.1, %v286_v21  ;;  %vm100_vm9 = vcmp.gt.f32.partialorder %v94_v38, 0.2  ;;  %vm83_vm10 = vcmp.ge.f32.partialorder %v77_v29, 0.0 }
  0x1c   :  { %140 = vst [vmem:[#allocation8] sm:$0xff] %v166_v39  ;;  %v168_v45 = vclamps-f32 %v124_v41, 1.0  ;;  %v106_v46 = vsub.f32 %v76_v17, %v88_v44  ;;  %v89_v47 = vsel %vm83_vm10, 0.1, %v286_v21  ;;  %v95_v48 = vand.u32 2147483647, %v77_v29 }
  0x1d   :  { %141 = vst [vmem:[#allocation8 + $0x8] sm:$0xff] %v167_v40  ;;  %v169_v49 = vclamps-f32 %v125_v43, 1.0  ;;  %v107_v50 = vsub.f32 %v77_v29, %v89_v47 }
  0x1e   :  { %142 = vst [vmem:[#allocation8 + $0x10] sm:$0xff] %v168_v45  ;;  %v112_v51 = vsel %vm100_vm9, %v106_v46, 0.0  ;;  %vm101_vm11 = vcmp.gt.f32.partialorder %v95_v48, 0.2 }
  0x1f   :  { %143 = vst [vmem:[#allocation8 + $0x18] sm:$0xff] %v169_v49  ;;  %v126_v52 = vmul.f32 %v117_v14, %v112_v51  ;;  %v113_v53 = vsel %vm101_vm11, %v107_v50, 0.0 }
  0x20   :  { %v127_v54 = vmul.f32 %v118_v16, %v113_v53 }
  0x21   :  { %v170_v55 = vclamps-f32 %v126_v52, 1.0 }
  0x22   :  { %v171_v56 = vclamps-f32 %v127_v54, 1.0 }
  0x23   :  { %144 = vst [vmem:[#allocation8 + $0x20] sm:$0xff] %v170_v55 }
  0x24   :  { %145 = vst [vmem:[#allocation8 + $0x28] sm:$0xff] %v171_v56 }
  0x25   :  { %158 = dma.vmem_to_hbm [thread:$0]  %s151_s2, 768, %s153_s30, [#allocation4], %s283_s22, %s283_s22, %s284_s23  }
  0x26   :  { %279 = dma.done.wait [#allocation4], 768  }
  0x27   :  { %280 = vsyncadd [#allocation4], 4294966528 }
  0x28   :  { %163 = vsyncpa [#allocation3], 1 }
  0x29   :  { %164 = vsyncpa [#allocation6], 1 }
  0x2a   :  { %165 = vsyncpa [#allocation4], 1 }

</bundles_post_ra>
